<compile_context>
chip_gen: v7x
topology: tpu7x:2x2x1
jax: 0.10.0
libtpu: 0.0.40
codegen_flags: <defaults>
</compile_context>

<pallas_src>
from typing import NamedTuple

import jax
import jax.numpy as jnp
from jax.experimental import pallas as pl
from jax.experimental.pallas import tpu as pltpu


_LANE = 128      # lane width: keep N dims lane-dense (unmasked vst)
_TILE_M = 128    # row tile for the grid path
_SMALL_M = 256   # at/below this many total rows, one grid-less call is cheapest


def _round_up(n, m):
    return ((n + m - 1) // m) * m


class PreparedParams(NamedTuple):
    """Weights pre-cast / pre-padded ONCE (not per forward call)."""
    w1: jax.Array   # (D_in, H)   bf16
    b1: jax.Array   # (1, H)      f32
    w2: jax.Array   # (H, E_pad)  bf16, zero-padded columns
    b2: jax.Array   # (1, E_pad)  f32,  zero-padded columns


def prepare_params(params):
    """One-time parameter prep: bf16 cast + lane-dense (128) output padding."""
    w1, b1, w2, b2 = params
    d_in, hidden = w1.shape
    emb = w2.shape[1]
    e_pad = max(_LANE, _round_up(emb, _LANE))
    w1_b = jnp.asarray(w1, jnp.bfloat16)
    b1_r = jnp.asarray(b1, jnp.float32).reshape(1, hidden)
    w2_p = jnp.zeros((hidden, e_pad), jnp.bfloat16).at[:, :emb].set(
        jnp.asarray(w2, jnp.bfloat16))
    b2_p = jnp.zeros((1, e_pad), jnp.float32).at[:, :emb].set(
        jnp.asarray(b2, jnp.float32).reshape(1, emb))
    return PreparedParams(w1_b, b1_r, w2_p, b2_p)


# ---------------------------------------------------------------------------
# Kernels
# ---------------------------------------------------------------------------

def _mlp_block(x, w1, b1, w2, b2, out_dtype):
    # Layer 1: bf16 x bf16 on the MXU, f32 accumulate; bias + ReLU in f32 (VPU).
    h = jnp.dot(x.astype(jnp.bfloat16), w1, preferred_element_type=jnp.float32)
    h = jnp.maximum(h + b1, 0.0)
    # Layer 2: bf16 activations on the MXU, f32 accumulate; bias in f32.
    y = jnp.dot(h.astype(jnp.bfloat16), w2, preferred_element_type=jnp.float32)
    return (y + b2).astype(out_dtype)


def _siamese_pair_kernel(x1_ref, x2_ref, w1_ref, b1_ref, w2_ref, b2_ref,
                         o1_ref, o2_ref):
    """Both Siamese branches in one launch; weights read from VMEM once."""
    w1 = w1_ref[...]
    b1 = b1_ref[...]
    w2 = w2_ref[...]
    b2 = b2_ref[...]
    o1_ref[...] = _mlp_block(x1_ref[...], w1, b1, w2, b2, o1_ref.dtype)
    o2_ref[...] = _mlp_block(x2_ref[...], w1, b1, w2, b2, o2_ref.dtype)


def _mlp_kernel(x_ref, w1_ref, b1_ref, w2_ref, b2_ref, o_ref):
    o_ref[...] = _mlp_block(x_ref[...], w1_ref[...], b1_ref[...],
                            w2_ref[...], b2_ref[...], o_ref.dtype)


# ---------------------------------------------------------------------------
# pallas_call wrappers
# ---------------------------------------------------------------------------

def _embed_pair_small(x1_rows, x2_rows, prep, out_dtype):
    """Grid-less path: whole-array VMEM blocks, both branches in one call."""
    m, d_in = x1_rows.shape
    hidden = prep.w1.shape[1]
    e_pad = prep.w2.shape[1]
    vmem = pl.BlockSpec(memory_space=pltpu.MemorySpace.VMEM)
    flops = 2 * (2 * m) * d_in * hidden + 2 * (2 * m) * hidden * e_pad
    bytes_accessed = (2 * m * d_in * x1_rows.dtype.itemsize
                      + prep.w1.size * 2 + prep.b1.size * 4
                      + prep.w2.size * 2 + prep.b2.size * 4
                      + 2 * m * e_pad * jnp.dtype(out_dtype).itemsize)
    o1, o2 = pl.pallas_call(
        _siamese_pair_kernel,
        out_shape=(jax.ShapeDtypeStruct((m, e_pad), out_dtype),
                   jax.ShapeDtypeStruct((m, e_pad), out_dtype)),
        in_specs=[vmem] * 6,
        out_specs=(vmem, vmem),
        cost_estimate=pl.CostEstimate(
            flops=flops, transcendentals=0, bytes_accessed=bytes_accessed),
    )(x1_rows, x2_rows, prep.w1, prep.b1, prep.w2, prep.b2)
    return o1, o2


def _embed_rows_small(x_rows, prep, out_dtype):
    """Grid-less single-branch path (get_embedding at small batch)."""
    m, d_in = x_rows.shape
    hidden = prep.w1.shape[1]
    e_pad = prep.w2.shape[1]
    vmem = pl.BlockSpec(memory_space=pltpu.MemorySpace.VMEM)
    flops = 2 * m * d_in * hidden + 2 * m * hidden * e_pad
    bytes_accessed = (m * d_in * x_rows.dtype.itemsize
                      + prep.w1.size * 2 + prep.b1.size * 4
                      + prep.w2.size * 2 + prep.b2.size * 4
                      + m * e_pad * jnp.dtype(out_dtype).itemsize)
    return pl.pallas_call(
        _mlp_kernel,
        out_shape=jax.ShapeDtypeStruct((m, e_pad), out_dtype),
        in_specs=[vmem] * 5,
        out_specs=vmem,
        cost_estimate=pl.CostEstimate(
            flops=flops, transcendentals=0, bytes_accessed=bytes_accessed),
    )(x_rows, prep.w1, prep.b1, prep.w2, prep.b2)


def _embed_rows_tiled(x_rows, prep, out_dtype, tm=_TILE_M):
    """M-tiled grid path for non-trivial row counts.

    Rows stream through the grid (x DMA pipelined against the two matmuls);
    weight BlockSpecs return a constant block so w1/w2/b1/b2 stay VMEM-resident
    across the whole grid.  The row axis is 'parallel' so v7x shards it across
    both TensorCores.  Per-step VMEM (double-buffered x tile + resident
    weights) is ~1.5 MiB — well under v7x's 64 MiB physical VMEM.
    """
    m, d_in = x_rows.shape
    hidden = prep.w1.shape[1]
    e_pad = prep.w2.shape[1]
    m_pad = _round_up(m, tm)
    if m_pad != m:
        x_rows = jnp.zeros((m_pad, d_in), x_rows.dtype).at[:m].set(x_rows)
    flops = 2 * m_pad * d_in * hidden + 2 * m_pad * hidden * e_pad
    bytes_accessed = (m_pad * d_in * x_rows.dtype.itemsize
                      + prep.w1.size * 2 + prep.b1.size * 4
                      + prep.w2.size * 2 + prep.b2.size * 4
                      + m_pad * e_pad * jnp.dtype(out_dtype).itemsize)
    out = pl.pallas_call(
        _mlp_kernel,
        out_shape=jax.ShapeDtypeStruct((m_pad, e_pad), out_dtype),
        grid=(m_pad // tm,),
        in_specs=[
            pl.BlockSpec((tm, d_in), lambda i: (i, 0)),        # x rows stream
            pl.BlockSpec((d_in, hidden), lambda i: (0, 0)),    # weights resident
            pl.BlockSpec((1, hidden), lambda i: (0, 0)),
            pl.BlockSpec((hidden, e_pad), lambda i: (0, 0)),
            pl.BlockSpec((1, e_pad), lambda i: (0, 0)),
        ],
        out_specs=pl.BlockSpec((tm, e_pad), lambda i: (i, 0)),
        compiler_params=pltpu.CompilerParams(
            dimension_semantics=("parallel",),
            vmem_limit_bytes=32 * 1024 * 1024,   # budget against v7x's 64 MiB
        ),
        cost_estimate=pl.CostEstimate(
            flops=flops, transcendentals=0, bytes_accessed=bytes_accessed),
    )(x_rows, prep.w1, prep.b1, prep.w2, prep.b2)
    return out[:m]


# ---------------------------------------------------------------------------
# SiameseNet forward / get_embedding
# ---------------------------------------------------------------------------

def siamese_net_forward(x1, x2, prep, emb, out_dtype=jnp.float32):
    """SiameseNet.forward: shared embedding_net on both inputs."""
    b = x1.shape[0]
    x1_rows = x1.reshape(b, -1)
    x2_rows = x2.reshape(b, -1)
    if 2 * b <= _SMALL_M:
        o1, o2 = _embed_pair_small(x1_rows, x2_rows, prep, out_dtype)
    else:
        # Large batch: one concat (+ bf16 cast fused by XLA), then stream rows
        # through the M-tiled grid with VMEM-resident weights.
        x_both = jnp.concatenate([x1_rows, x2_rows], axis=0).astype(jnp.bfloat16)
        o = _embed_rows_tiled(x_both, prep, out_dtype)
        o1, o2 = o[:b], o[b:]
    return o1[:, :emb], o2[:, :emb]


def get_embedding(x, prep, emb, out_dtype=jnp.float32):
    """SiameseNet.get_embedding: embedding_net on a single batch."""
    b = x.shape[0]
    x_rows = x.reshape(b, -1)
    if b <= _SMALL_M:
        o = _embed_rows_small(x_rows, prep, out_dtype)
    else:
        o = _embed_rows_tiled(x_rows.astype(jnp.bfloat16), prep, out_dtype)
    return o[:, :emb]


def init_params(key, d_in, hidden, emb):
    k1, k2 = jax.random.split(key)
    # Deterministic, small-scale init (synthetic weights, not a checkpoint).
    w1 = jax.random.normal(k1, (d_in, hidden), jnp.float32) * (1.0 / jnp.sqrt(d_in))
    b1 = jnp.zeros((1, hidden), jnp.float32)
    w2 = jax.random.normal(k2, (hidden, emb), jnp.float32) * (1.0 / jnp.sqrt(hidden))
    b2 = jnp.zeros((1, emb), jnp.float32)
    return (w1, b1, w2, b2)


if __name__ == "__main__":
    # Small shapes consistent with the module: two NCHW image batches.
    B, C, H, W = 2, 4, 16, 16
    D_IN = C * H * W          # 1024
    HIDDEN = 128
    EMB = 64

    key = jax.random.PRNGKey(0)
    kx1, kx2, kp = jax.random.split(key, 3)
    x1 = jax.random.normal(kx1, (B, C, H, W), jnp.float32)
    x2 = jax.random.normal(kx2, (B, C, H, W), jnp.float32)
    raw_params = init_params(kp, D_IN, HIDDEN, EMB)

    # One-time parameter prep (bf16 cast + lane padding) -- NOT per forward.
    prep = jax.block_until_ready(prepare_params(raw_params))

    fwd = jax.jit(siamese_net_forward, static_argnames=("emb", "out_dtype"))
    emb_fn = jax.jit(get_embedding, static_argnames=("emb", "out_dtype"))

    out1, out2 = fwd(x1, x2, prep, emb=EMB)
    jax.block_until_ready((out1, out2))

    # Reference in plain JAX (f32 math; kernel uses bf16 operands with f32
    # accumulation, hence the loosened tolerance -- intentional).
    def ref_embed(x):
        w1, b1, w2, b2 = raw_params
        h = jnp.maximum(x.reshape(x.shape[0], -1) @ w1 + b1, 0.0)
        return h @ w2 + b2

    r1, r2 = ref_embed(x1), ref_embed(x2)
    assert out1.shape == (B, EMB) and out2.shape == (B, EMB)
    assert jnp.allclose(out1, r1, atol=5e-2, rtol=5e-2)
    assert jnp.allclose(out2, r2, atol=5e-2, rtol=5e-2)

    # get_embedding (single-branch, grid-less path).
    e1 = emb_fn(x1, prep, emb=EMB)
    jax.block_until_ready(e1)
    assert e1.shape == (B, EMB)
    assert jnp.allclose(e1, r1, atol=5e-2, rtol=5e-2)

    # Exercise the M-tiled grid path (2*BL = 384 rows > 256 -> grid=(3,)).
    BL = 192
    kx3, kx4 = jax.random.split(jax.random.PRNGKey(1))
    xl1 = jax.random.normal(kx3, (BL, C, H, W), jnp.float32)
    xl2 = jax.random.normal(kx4, (BL, C, H, W), jnp.float32)
    ol1, ol2 = fwd(xl1, xl2, prep, emb=EMB)
    jax.block_until_ready((ol1, ol2))
    rl1, rl2 = ref_embed(xl1), ref_embed(xl2)
    assert ol1.shape == (BL, EMB) and ol2.shape == (BL, EMB)
    assert jnp.allclose(ol1, rl1, atol=5e-2, rtol=5e-2)
    assert jnp.allclose(ol2, rl2, atol=5e-2, rtol=5e-2)

    print("KERNEL_OK")
</pallas_src>

<mosaic_0001>
module attributes {stable_mosaic.version = 11 : i64} {
  func.func @_siamese_pair_kernel(%arg0: memref<2x1024xf32, #tpu.memory_space<vmem>>, %arg1: memref<2x1024xf32, #tpu.memory_space<vmem>>, %arg2: memref<1024x128xbf16, #tpu.memory_space<vmem>>, %arg3: memref<1x128xf32, #tpu.memory_space<vmem>>, %arg4: memref<128x128xbf16, #tpu.memory_space<vmem>>, %arg5: memref<1x128xf32, #tpu.memory_space<vmem>>, %arg6: memref<2x128xf32, #tpu.memory_space<vmem>>, %arg7: memref<2x128xf32, #tpu.memory_space<vmem>>) attributes {dimension_semantics = [], scalar_prefetch = 0 : i64, scratch_operands = 0 : i64, tpu.core_type = #tpu.core_type<tc>} {
    %c0 = arith.constant 0 : index
    %c0_0 = arith.constant 0 : index
    %0 = vector.load %arg2[%c0, %c0_0] : memref<1024x128xbf16, #tpu.memory_space<vmem>>, vector<1024x128xbf16>
    %c0_1 = arith.constant 0 : index
    %c0_2 = arith.constant 0 : index
    %1 = vector.load %arg3[%c0_1, %c0_2] : memref<1x128xf32, #tpu.memory_space<vmem>>, vector<1x128xf32>
    %c0_3 = arith.constant 0 : index
    %c0_4 = arith.constant 0 : index
    %2 = vector.load %arg4[%c0_3, %c0_4] : memref<128x128xbf16, #tpu.memory_space<vmem>>, vector<128x128xbf16>
    %c0_5 = arith.constant 0 : index
    %c0_6 = arith.constant 0 : index
    %3 = vector.load %arg5[%c0_5, %c0_6] : memref<1x128xf32, #tpu.memory_space<vmem>>, vector<1x128xf32>
    %c0_7 = arith.constant 0 : index
    %c0_8 = arith.constant 0 : index
    %4 = vector.load %arg0[%c0_7, %c0_8] : memref<2x1024xf32, #tpu.memory_space<vmem>>, vector<2x1024xf32>
    %5 = arith.truncf %4 : vector<2x1024xf32> to vector<2x1024xbf16>
    %cst = arith.constant dense<0.000000e+00> : vector<2x128xf32>
    %6 = tpu.matmul %5, %0, %cst {dimension_numbers = #tpu.dot_dimension_numbers<[1], [0], [0], [1], [0, 0, 1, 1], [], []>} : vector<2x1024xbf16>, vector<1024x128xbf16>, vector<2x128xf32> -> vector<2x128xf32>
    %7 = vector.broadcast %1 : vector<1x128xf32> to vector<2x128xf32>
    %8 = arith.addf %6, %7 : vector<2x128xf32>
    %cst_9 = arith.constant 0.000000e+00 : f32
    %9 = vector.broadcast %cst_9 : f32 to vector<2x128xf32>
    %10 = arith.maximumf %8, %9 : vector<2x128xf32>
    %11 = arith.truncf %10 : vector<2x128xf32> to vector<2x128xbf16>
    %cst_10 = arith.constant dense<0.000000e+00> : vector<2x128xf32>
    %12 = tpu.matmul %11, %2, %cst_10 {dimension_numbers = #tpu.dot_dimension_numbers<[1], [0], [0], [1], [0, 0, 1, 1], [], []>} : vector<2x128xbf16>, vector<128x128xbf16>, vector<2x128xf32> -> vector<2x128xf32>
    %13 = vector.broadcast %3 : vector<1x128xf32> to vector<2x128xf32>
    %14 = arith.addf %12, %13 : vector<2x128xf32>
    %c0_11 = arith.constant 0 : index
    %c0_12 = arith.constant 0 : index
    %15 = vector.load %arg6[%c0_11, %c0_12] : memref<2x128xf32, #tpu.memory_space<vmem>>, vector<2x128xf32>
    tpu.vector_store %arg6[%c0_11, %c0_12], %14 {strides = array<i32>} : memref<2x128xf32, #tpu.memory_space<vmem>>, vector<2x128xf32>,
    %c0_13 = arith.constant 0 : index
    %c0_14 = arith.constant 0 : index
    %16 = vector.load %arg1[%c0_13, %c0_14] : memref<2x1024xf32, #tpu.memory_space<vmem>>, vector<2x1024xf32>
    %17 = arith.truncf %16 : vector<2x1024xf32> to vector<2x1024xbf16>
    %cst_15 = arith.constant dense<0.000000e+00> : vector<2x128xf32>
    %18 = tpu.matmul %17, %0, %cst_15 {dimension_numbers = #tpu.dot_dimension_numbers<[1], [0], [0], [1], [0, 0, 1, 1], [], []>} : vector<2x1024xbf16>, vector<1024x128xbf16>, vector<2x128xf32> -> vector<2x128xf32>
    %19 = vector.broadcast %1 : vector<1x128xf32> to vector<2x128xf32>
    %20 = arith.addf %18, %19 : vector<2x128xf32>
    %cst_16 = arith.constant 0.000000e+00 : f32
    %21 = vector.broadcast %cst_16 : f32 to vector<2x128xf32>
    %22 = arith.maximumf %20, %21 : vector<2x128xf32>
    %23 = arith.truncf %22 : vector<2x128xf32> to vector<2x128xbf16>
    %cst_17 = arith.constant dense<0.000000e+00> : vector<2x128xf32>
    %24 = tpu.matmul %23, %2, %cst_17 {dimension_numbers = #tpu.dot_dimension_numbers<[1], [0], [0], [1], [0, 0, 1, 1], [], []>} : vector<2x128xbf16>, vector<128x128xbf16>, vector<2x128xf32> -> vector<2x128xf32>
    %25 = vector.broadcast %3 : vector<1x128xf32> to vector<2x128xf32>
    %26 = arith.addf %24, %25 : vector<2x128xf32>
    %c0_18 = arith.constant 0 : index
    %c0_19 = arith.constant 0 : index
    %27 = vector.load %arg7[%c0_18, %c0_19] : memref<2x128xf32, #tpu.memory_space<vmem>>, vector<2x128xf32>
    tpu.vector_store %arg7[%c0_18, %c0_19], %26 {strides = array<i32>} : memref<2x128xf32, #tpu.memory_space<vmem>>, vector<2x128xf32>,
    return
  }
}

</mosaic_0001>

<bundles_post_ra>
// kernel: siamese_net_forward.1
= control target key start
LH: loop header
LB: loop body
LE: loop exit
PB: predicated region body
PF: predicated region fallthrough
CT: control target
= control target key end

     0   :  { %13 = vsyncpa [#allocation3], 0  ;;  %s2065_s0 = inlined_call_operand.vmem [shape: f32[2,1024], index: 0, kind: input, shape index: {}]   ;;  %s2066_s1 = inlined_call_operand.vmem [shape: f32[2,1024], index: 1, kind: input, shape index: {}]   ;;  %s2067_s2 = inlined_call_operand.hbm [shape: bf16[1024,128], index: 2, kind: input, shape index: {}]   ;;  %s2068_s3 = inlined_call_operand.vmem [shape: f32[1,128], index: 3, kind: input, shape index: {}]   ;;  %s2069_s4 = inlined_call_operand.vmem [shape: bf16[128,128], index: 4, kind: input, shape index: {}]   ;;  %s2070_s5 = inlined_call_operand.vmem [shape: f32[1,128], index: 5, kind: input, shape index: {}]   ;;  %s2071_s6 = inlined_call_operand.hbm [shape: f32[2,128], index: 6, kind: output, shape index: {0}]   ;;  %s2072_s7 = inlined_call_operand.hbm [shape: f32[2,128], index: 7, kind: output, shape index: {1}]  }
   0x1   :  { %14 = vsyncpa [#allocation4], 0 }
   0x2   :  { %15 = vsyncpa [#allocation7], 0  ;;  %s1639_s24 = smov [#allocation2]   ;;  %s1567_s28 = scalar_lea.hbm %s2067_s2, 8192 }
   0x3   :  { %s25_s25 = sshll.u32 %s1639_s24, 4  ;;  %p1568_p0 = scmp.ne.s32.totalorder %s2067_s2, %s1567_s28  ;;  %s26_s25 = int_to_ptr.vmem [resolvable:$true] %s25_s25 }
   0x4   :  { %p1571_p1 = scmp.lt.u32.totalorder %s1567_s28, %s2067_s2 }
   0x6   :  { %p1573_p2 = pnand %p1571_p1, %p1568_p0 }
   0x8   :  { %1576 = shalt.err (!%p1573_p2)
}
   0x9   :  { %s1577_s10 = scalar_lea.vmem %s26_s25, 8192  ;;  %p1582_p4 = scmp.lt.s32.totalorder %s26_s25, %s26_s25 }
   0xa   :  { %p1578_p3 = scmp.ne.s32.totalorder %s26_s25, %s1577_s10  ;;  %p1583_p5 = scmp.lt.s32.totalorder %s1577_s10, %s1577_s10 }
   0xc   :  { %p1584_p6 = por %p1583_p5, %p1582_p4 }
   0xe   :  { %p1585_p7 = pnand %p1584_p6, %p1578_p3 }
  0x10   :  { %1588 = shalt.err (!%p1585_p7)
}
  0x11   :  { %s1640_s11 = smov 64   ;;  %s1641_s12 = smov 4  }
  0x12   :  { %31 = dma.hbm_to_vmem [thread:$0]  %s2067_s2, 8192, %s26_s25, [#allocation3], %s1640_s11, %s1640_s11, %s1641_s12  }
  0x13   :  { %1633 = dma.done.wait [#allocation3], 8192  }
  0x14   :  { %1634 = vsyncadd [#allocation3], 4294959104  ;;  %v1699_v0 = vld [vmem:[#allocation2 + $0x40] sm:$0xff]   ;;  %v1710_v4 = vld [vmem:[#allocation2 + $0x48] sm:$0xff]   ;;  %v1642_v22 = vmov 1983009808   ;;  %v196_v24 = vlaneseq }
  0x15   :  { %v1701_v1 = vld [vmem:[#allocation2 + $0xc0] sm:$0xff]   ;;  %1249 = vmatprep.subr.bf16.mxu0 %v1699_v0  ;;  %v1713_v5 = vld [vmem:[#allocation2 + $0xc8] sm:$0xff]   ;;  %v1722_v8 = vld [vmem:[#allocation2 + $0x50] sm:$0xff]   ;;  %v194_v23 = vunpack.c.l.s4 %v1642_v22  ;;  %vm1644_vm0 = vmmov 0  }
  0x16   :  { %v1704_v2 = vld [vmem:[#allocation2] sm:$0xff]   ;;  %1271 = vmatprep.subr.bf16.mxu1 %v1701_v1  ;;  %v1716_v6 = vld [vmem:[#allocation2 + $0x8] sm:$0xff]   ;;  %v1725_v9 = vld [vmem:[#allocation2 + $0xd0] sm:$0xff]   ;;  %v197_v30 = vshrl.u32 %v196_v24, 7 }
  0x17   :  { %v1707_v3 = vld [vmem:[#allocation2 + $0x80] sm:$0xff]   ;;  %1250 = vmatpush3.bf16.msra.mxu0 %v1704_v2  ;;  %v1719_v7 = vld [vmem:[#allocation2 + $0x88] sm:$0xff]   ;;  %v1728_v10 = vld [vmem:[#allocation2 + $0x10] sm:$0xff]   ;;  %v195_v29 = vunpack.c.0.s8 %v194_v23 }
  0x18   :  { %1272 = vmatpush3.bf16.msra.mxu1 %v1707_v3  ;;  %1251 = vmatprep.subr.bf16.mxu0 %v1710_v4  ;;  %v1731_v11 = vld [vmem:[#allocation2 + $0x90] sm:$0xff]   ;;  %v1734_v12 = vld [vmem:[#allocation2 + $0x58] sm:$0xff]   ;;  %v1746_v16 = vld [vmem:[#allocation2 + $0x60] sm:$0xff]  }
  0x19   :  { %1273 = vmatprep.subr.bf16.mxu1 %v1713_v5  ;;  %v1737_v13 = vld [vmem:[#allocation2 + $0xd8] sm:$0xff]   ;;  %v1749_v17 = vld [vmem:[#allocation2 + $0xe0] sm:$0xff]   ;;  %v1758_v20 = vld [vmem:[#allocation2 + $0x68] sm:$0xff]   ;;  %v1787_v35 = vsub.s32 %v195_v29, %v197_v30 }
  0x1a   :  { %v1740_v14 = vld [vmem:[#allocation2 + $0x18] sm:$0xff]   ;;  %v1752_v18 = vld [vmem:[#allocation2 + $0x20] sm:$0xff]   ;;  %v1761_v21 = vld [vmem:[#allocation2 + $0xe8] sm:$0xff]  }
  0x1b   :  { %1252 = vmatpush3.bf16.msra.mxu0 %v1716_v6  ;;  %v1743_v15 = vld [vmem:[#allocation2 + $0x98] sm:$0xff]   ;;  %v1755_v19 = vld [vmem:[#allocation2 + $0xa0] sm:$0xff]   ;;  %v1764_v25 = vld [vmem:[#allocation2 + $0x28] sm:$0xff]  }
  0x1c   :  { %1274 = vmatpush3.bf16.msra.mxu1 %v1719_v7  ;;  %1253 = vmatprep.subr.bf16.mxu0 %v1722_v8  ;;  %v1767_v26 = vld [vmem:[#allocation2 + $0xa8] sm:$0xff]   ;;  %v1770_v27 = vld [vmem:[#allocation2 + $0x70] sm:$0xff]   ;;  %v1782_v33 = vld [vmem:[#allocation2 + $0x78] sm:$0xff]  }
  0x1d   :  { %1275 = vmatprep.subr.bf16.mxu1 %v1725_v9  ;;  %v1773_v28 = vld [vmem:[#allocation2 + $0xf0] sm:$0xff]   ;;  %v1785_v34 = vld [vmem:[#allocation2 + $0xf8] sm:$0xff]   ;;  %v188_v38 = vld [vmem:[%s2065_s0] sm:$0xff] }
  0x1e   :  { %v1776_v31 = vld [vmem:[#allocation2 + $0x30] sm:$0xff]   ;;  %v1790_v36 = vld [vmem:[#allocation2 + $0x38] sm:$0xff]   ;;  %v199_v39 = vrot.slane %v188_v38, %v1787_v35  ;;  %v192_v40 = vcombine.high %v188_v38, %v188_v38  ;;  %v1801_v41 = vld [vmem:[#allocation2 + $0x140] sm:$0xff]  }
  0x1f   :  { %1254 = vmatpush3.bf16.msra.mxu0 %v1728_v10  ;;  %v1779_v32 = vld [vmem:[#allocation2 + $0xb0] sm:$0xff]   ;;  %v1793_v37 = vld [vmem:[#allocation2 + $0xb8] sm:$0xff]   ;;  %v1803_v42 = vld [vmem:[#allocation2 + $0x1c0] sm:$0xff]  }
  0x20   :  { %1276 = vmatpush3.bf16.msra.mxu1 %v1731_v11  ;;  %1255 = vmatprep.subr.bf16.mxu0 %v1734_v12  ;;  %v207_v43 = vcombine.high %v199_v39, %v199_v39  ;;  %v206_v44 = vrot.slane %v192_v40, %v1787_v35  ;;  %v234_v45 = vpack.c.bf16 %v199_v39, %v199_v39  ;;  %v1808_v46 = vld [vmem:[#allocation2 + $0x100] sm:$0xff]   ;;  %v1812_v51 = vld [vmem:[#allocation2 + $0x148] sm:$0xff]   ;;  %v1822_v56 = vld [vmem:[#allocation2 + $0x150] sm:$0xff]  }
  0x21   :  { %1277 = vmatprep.subr.bf16.mxu1 %v1737_v13  ;;  %v1810_v49 = vld [vmem:[#allocation2 + $0x180] sm:$0xff]   ;;  %v1814_v53 = vld [vmem:[#allocation2 + $0x1c8] sm:$0xff]   ;;  %v1825_v57 = vld [vmem:[#allocation2 + $0x1d0] sm:$0xff]  }
  0x22   :  { %v235_v47 = vpack.c.bf16 %v207_v43, %v207_v43  ;;  %v208_v48 = vcombine.high %v206_v44, %v206_v44  ;;  %v236_v50 = vpack.c.bf16 %v206_v44, %v206_v44  ;;  %2084 = vst [vmem:[#allocation11_spill] sm:$0xff] %v1814_v53  ;;  %v1816_v54 = vld [vmem:[#allocation2 + $0x108] sm:$0xff]   ;;  %2086 = vst [vmem:[#allocation13_spill] sm:$0xff] %v1825_v57  ;;  %v1828_v58 = vld [vmem:[#allocation2 + $0x110] sm:$0xff]  }
  0x23   :  { %1256 = vmatpush3.bf16.msra.mxu0 %v1740_v14  ;;  %v1819_v55 = vld [vmem:[#allocation2 + $0x188] sm:$0xff]   ;;  %v1831_v59 = vld [vmem:[#allocation2 + $0x190] sm:$0xff]   ;;  %v1834_v60 = vld [vmem:[#allocation2 + $0x158] sm:$0xff]  }
  0x24   :  { %1278 = vmatpush3.bf16.msra.mxu1 %v1743_v15  ;;  %1257 = vmatprep.subr.bf16.mxu0 %v1746_v16  ;;  %v237_v52 = vpack.c.bf16 %v208_v48, %v208_v48  ;;  %2085 = vst [vmem:[#allocation12_spill] sm:$0xff] %v1819_v55  ;;  %2087 = vst [vmem:[#allocation14_spill] sm:$0xff] %v1831_v59  ;;  %v1837_v61 = vld [vmem:[#allocation2 + $0x1d8] sm:$0xff]   ;;  %v1846_v22 = vld [vmem:[#allocation2 + $0x160] sm:$0xff]  }
  0x25   :  { %1279 = vmatprep.subr.bf16.mxu1 %v1749_v17  ;;  %664 = vmatprep.mubr.bf16.mxu0 %v235_v47  ;;  %2088 = vst [vmem:[#allocation15_spill] sm:$0xff] %v1837_v61  ;;  %v1840_v62 = vld [vmem:[#allocation2 + $0x118] sm:$0xff]   ;;  %v1849_v23 = vld [vmem:[#allocation2 + $0x1e0] sm:$0xff]   ;;  %v1858_v30 = vld [vmem:[#allocation2 + $0x168] sm:$0xff]  }
  0x26   :  { %704 = vmatprep.mubr.bf16.mxu1 %v237_v52  ;;  %v1843_v63 = vld [vmem:[#allocation2 + $0x198] sm:$0xff]   ;;  %2090 = vst [vmem:[#allocation17_spill] sm:$0xff] %v1849_v23  ;;  %v1852_v24 = vld [vmem:[#allocation2 + $0x120] sm:$0xff]   ;;  %v1861_v38 = vld [vmem:[#allocation2 + $0x1e8] sm:$0xff]  }
  0x27   :  { %1258 = vmatpush3.bf16.msra.mxu0 %v1752_v18  ;;  %2089 = vst [vmem:[#allocation16_spill] sm:$0xff] %v1843_v63  ;;  %v1855_v29 = vld [vmem:[#allocation2 + $0x1a0] sm:$0xff]   ;;  %2092 = vst [vmem:[#allocation19_spill] sm:$0xff] %v1861_v38  ;;  %v1864_v39 = vld [vmem:[#allocation2 + $0x128] sm:$0xff]  }
  0x28   :  { %1280 = vmatpush3.bf16.msra.mxu1 %v1755_v19  ;;  %1259 = vmatprep.subr.bf16.mxu0 %v1758_v20  ;;  %2091 = vst [vmem:[#allocation18_spill] sm:$0xff] %v1855_v29  ;;  %v1867_v40 = vld [vmem:[#allocation2 + $0x1a8] sm:$0xff]   ;;  %v1870_v43 = vld [vmem:[#allocation2 + $0x170] sm:$0xff]   ;;  %v1882_v48 = vld [vmem:[#allocation2 + $0x178] sm:$0xff]  }
  0x29   :  { %1281 = vmatprep.subr.bf16.mxu1 %v1761_v21  ;;  %2093 = vst [vmem:[#allocation20_spill] sm:$0xff] %v1867_v40  ;;  %v1873_v44 = vld [vmem:[#allocation2 + $0x1f0] sm:$0xff]   ;;  %v1888_v52 = vld [vmem:[#allocation2 + $0x138] sm:$0xff]  }
  0x2a   :  { %2094 = vst [vmem:[#allocation21_spill] sm:$0xff] %v1873_v44  ;;  %v1879_v47 = vld [vmem:[#allocation2 + $0x1b0] sm:$0xff]  }
  0x2b   :  { %1260 = vmatpush3.bf16.msra.mxu0 %v1764_v25 }
  0x2c   :  { %1282 = vmatpush3.bf16.msra.mxu1 %v1767_v26  ;;  %1261 = vmatprep.subr.bf16.mxu0 %v1770_v27 }
  0x2d   :  { %1283 = vmatprep.subr.bf16.mxu1 %v1773_v28 }
  0x2f   :  { %1262 = vmatpush3.bf16.msra.mxu0 %v1776_v31 }
  0x30   :  { %1284 = vmatpush3.bf16.msra.mxu1 %v1779_v32  ;;  %1263 = vmatprep.subr.bf16.mxu0 %v1782_v33 }
  0x31   :  { %1285 = vmatprep.subr.bf16.mxu1 %v1785_v34 }
  0x33   :  { %1264 = vmatpush3.bf16.msra.mxu0 %v1790_v36 }
  0x34   :  { %1286 = vmatpush3.bf16.msra.mxu1 %v1793_v37  ;;  %1293 = vmatprep.subr.bf16.mxu0 %v1801_v41 }
  0x35   :  { %1315 = vmatprep.subr.bf16.mxu1 %v1803_v42 }
  0x36   :  { %665 = vmatmul.mubr.bf16.vlgmr.msra.gmra.mrb[0].mxu0 %v234_v45  ;;  %v1876_v45 = vld [vmem:[#allocation2 + $0x130] sm:$0xff]  }
  0x37   :  { %1294 = vmatpush3.bf16.msra.mxu0 %v1808_v46  ;;  %705 = vmatmul.mubr.bf16.vlgmr.msra.gmra.mrb[0].mxu1 %v236_v50  ;;  %v1885_v50 = vld [vmem:[#allocation2 + $0x1f8] sm:$0xff]  }
  0x38   :  { %1295 = vmatprep.subr.bf16.mxu0 %v1812_v51  ;;  %1316 = vmatpush3.bf16.msra.mxu1 %v1810_v49 }
  0x39   :  { %1317 = vmatprep.subr.bf16.mxu1 %v1814_v53 }
  0x3b   :  { %1296 = vmatpush3.bf16.msra.mxu0 %v1816_v54 }
  0x3c   :  { %1297 = vmatprep.subr.bf16.mxu0 %v1822_v56  ;;  %1318 = vmatpush3.bf16.msra.mxu1 %v1819_v55 }
  0x3d   :  { %1319 = vmatprep.subr.bf16.mxu1 %v1825_v57 }
  0x3f   :  { %1298 = vmatpush3.bf16.msra.mxu0 %v1828_v58 }
  0x40   :  { %1299 = vmatprep.subr.bf16.mxu0 %v1834_v60  ;;  %1320 = vmatpush3.bf16.msra.mxu1 %v1831_v59 }
  0x41   :  { %1321 = vmatprep.subr.bf16.mxu1 %v1837_v61 }
  0x43   :  { %1300 = vmatpush3.bf16.msra.mxu0 %v1840_v62 }
  0x44   :  { %1301 = vmatprep.subr.bf16.mxu0 %v1846_v22  ;;  %1322 = vmatpush3.bf16.msra.mxu1 %v1843_v63 }
  0x45   :  { %1323 = vmatprep.subr.bf16.mxu1 %v1849_v23 }
  0x47   :  { %1302 = vmatpush3.bf16.msra.mxu0 %v1852_v24 }
  0x48   :  { %1303 = vmatprep.subr.bf16.mxu0 %v1858_v30  ;;  %1324 = vmatpush3.bf16.msra.mxu1 %v1855_v29  ;;  %v1894_v29 = vld [vmem:[#allocation2 + $0x1b8] sm:$0xff]  }
  0x49   :  { %1325 = vmatprep.subr.bf16.mxu1 %v1861_v38  ;;  %v189_v38 = vld [vmem:[%s2065_s0 + $0x8] sm:$0xff] }
  0x4a   :  { %v216_v23 = vrot.slane %v189_v38, %v1787_v35  ;;  %v209_v63 = vcombine.high %v189_v38, %v189_v38 }
  0x4b   :  { %1304 = vmatpush3.bf16.msra.mxu0 %v1864_v39 }
  0x4c   :  { %1305 = vmatprep.subr.bf16.mxu0 %v1870_v43  ;;  %1326 = vmatpush3.bf16.msra.mxu1 %v1867_v40  ;;  %v224_v40 = vcombine.high %v216_v23, %v216_v23  ;;  %v238_v61 = vpack.c.bf16 %v216_v23, %v216_v23 }
  0x4d   :  { %1327 = vmatprep.subr.bf16.mxu1 %v1873_v44  ;;  %v223_v44 = vrot.slane %v209_v63, %v1787_v35 }
  0x4e   :  { %v239_v59 = vpack.c.bf16 %v224_v40, %v224_v40 }
  0x4f   :  { %1306 = vmatpush3.bf16.msra.mxu0 %v1876_v45  ;;  %v225_v57 = vcombine.high %v223_v44, %v223_v44  ;;  %v240_v55 = vpack.c.bf16 %v223_v44, %v223_v44 }
  0x50   :  { %1307 = vmatprep.subr.bf16.mxu0 %v1882_v48  ;;  %1328 = vmatpush3.bf16.msra.mxu1 %v1879_v47 }
  0x51   :  { %1329 = vmatprep.subr.bf16.mxu1 %v1885_v50  ;;  %744 = vmatprep.mubr.bf16.mxu0 %v239_v59  ;;  %v241_v53 = vpack.c.bf16 %v225_v57, %v225_v57 }
  0x53   :  { %1308 = vmatpush3.bf16.msra.mxu0 %v1888_v52  ;;  %784 = vmatprep.mubr.bf16.mxu1 %v241_v53  ;;  %v1997_v53 = vld [vmem:[%s2068_s3] ss:$0 sm:$0xff] }
  0x54   :  { %1330 = vmatpush3.bf16.msra.mxu1 %v1894_v29 }
  0x55   :  { %1346 = vmatprep.subr.bf16.mxu1 %v1699_v0  ;;  %v1557_v0 = vld [vmem:[%s2069_s4] sm:$0xff]  }
  0x56   :  { %745 = vmatmul.mubr.bf16.vlgmr.msra.gmra.mrb[4].mxu0 %v238_v61 }
  0x57   :  { %785 = vmatmul.mubr.bf16.vlgmr.msra.gmra.mrb[4].mxu1 %v240_v55 }
  0x58   :  { %1347 = vmatpush3.bf16.msra.mxu1 %v1704_v2  ;;  %v1643_v2 = vmov 0.0  }
  0x59   :  { %1348 = vmatprep.subr.bf16.mxu1 %v1710_v4  ;;  %1443 = vmatprep.subr.bf16.mxu0 %v1643_v2  ;;  %v1558_v4 = vld [vmem:[%s2069_s4 + $0x8] sm:$0xff]  }
  0x5a   :  { %1444 = vmatpush3.bf16.msra.mxu0 %v1557_v0  ;;  %1459 = vmatprep.mubr.msk.bf16.mxu0 %vm1644_vm0, %v1643_v2 }
  0x5b   :  { %1445 = vmatprep.subr.bf16.mxu0 %v1643_v2 }
  0x5c   :  { %1349 = vmatpush3.bf16.msra.mxu1 %v1716_v6  ;;  %v1559_v6 = vld [vmem:[%s2069_s4 + $0x10] sm:$0xff]  }
  0x5d   :  { %1350 = vmatprep.subr.bf16.mxu1 %v1722_v8  ;;  %v1560_v8 = vld [vmem:[%s2069_s4 + $0x18] sm:$0xff]  }
  0x5e   :  { %1446 = vmatpush3.bf16.msra.mxu0 %v1558_v4 }
  0x5f   :  { %1447 = vmatprep.subr.bf16.mxu0 %v1643_v2 }
  0x60   :  { %1351 = vmatpush3.bf16.msra.mxu1 %v1728_v10  ;;  %v1561_v10 = vld [vmem:[%s2069_s4 + $0x20] sm:$0xff]  }
  0x61   :  { %1352 = vmatprep.subr.bf16.mxu1 %v1734_v12  ;;  %v1562_v12 = vld [vmem:[%s2069_s4 + $0x28] sm:$0xff]  }
  0x62   :  { %1448 = vmatpush3.bf16.msra.mxu0 %v1559_v6 }
  0x63   :  { %1449 = vmatprep.subr.bf16.mxu0 %v1643_v2 }
  0x64   :  { %1353 = vmatpush3.bf16.msra.mxu1 %v1740_v14  ;;  %v1563_v14 = vld [vmem:[%s2069_s4 + $0x30] sm:$0xff]  }
  0x65   :  { %1354 = vmatprep.subr.bf16.mxu1 %v1746_v16  ;;  %v1564_v16 = vld [vmem:[%s2069_s4 + $0x38] sm:$0xff]  }
  0x66   :  { %1450 = vmatpush3.bf16.msra.mxu0 %v1560_v8 }
  0x67   :  { %1451 = vmatprep.subr.bf16.mxu0 %v1643_v2 }
  0x68   :  { %1355 = vmatpush3.bf16.msra.mxu1 %v1752_v18  ;;  %v1955_v18 = vld [vmem:[%s2066_s1] sm:$0xff] }
  0x69   :  { %1356 = vmatprep.subr.bf16.mxu1 %v1758_v20  ;;  %v900_v20 = vrot.slane %v1955_v18, %v1787_v35  ;;  %v893_v23 = vcombine.high %v1955_v18, %v1955_v18 }
  0x6a   :  { %1452 = vmatpush3.bf16.msra.mxu0 %v1561_v10 }
  0x6b   :  { %1453 = vmatprep.subr.bf16.mxu0 %v1643_v2  ;;  %v907_v38 = vrot.slane %v893_v23, %v1787_v35 }
  0x6c   :  { %1357 = vmatpush3.bf16.msra.mxu1 %v1764_v25  ;;  %v908_v25 = vcombine.high %v900_v20, %v900_v20 }
  0x6d   :  { %1358 = vmatprep.subr.bf16.mxu1 %v1770_v27 }
  0x6e   :  { %1454 = vmatpush3.bf16.msra.mxu0 %v1562_v12  ;;  %v936_v27 = vpack.c.bf16 %v908_v25, %v908_v25 }
  0x6f   :  { %1455 = vmatprep.subr.bf16.mxu0 %v1643_v2 }
  0x70   :  { %1359 = vmatpush3.bf16.msra.mxu1 %v1776_v31  ;;  %v935_v31 = vpack.c.bf16 %v900_v20, %v900_v20  ;;  %975 = vmatprep.mubr.bf16.mxu1 %v936_v27 }
  0x71   :  { %1360 = vmatprep.subr.bf16.mxu1 %v1782_v33 }
  0x72   :  { %1456 = vmatpush3.bf16.msra.mxu0 %v1563_v14 }
  0x73   :  { %1457 = vmatprep.subr.bf16.mxu0 %v1643_v2 }
  0x74   :  { %1361 = vmatpush3.bf16.msra.mxu1 %v1790_v36 }
  0x75   :  { %1390 = vmatprep.subr.bf16.mxu1 %v1801_v41 }
  0x76   :  { %1458 = vmatpush3.bf16.msra.mxu0 %v1564_v16 }
  0x77   :  { %1368 = vmatprep.subr.bf16.mxu0 %v1701_v1  ;;  %976 = vmatmul.mubr.bf16.vlgmr.msra.gmra.mrb[8].mxu1 %v935_v31  ;;  %v1977_v1 = vld [vmem:[%s2066_s1 + $0x8] sm:$0xff] }
  0x78   :  { %1391 = vmatpush3.bf16.msra.mxu1 %v1808_v46  ;;  %v917_v33 = vrot.slane %v1977_v1, %v1787_v35 }
  0x79   :  { %1392 = vmatprep.subr.bf16.mxu1 %v1812_v51 }
  0x7a   :  { %v925_v36 = vcombine.high %v917_v33, %v917_v33  ;;  %v939_v46 = vpack.c.bf16 %v917_v33, %v917_v33 }
  0x7c   :  { %1393 = vmatpush3.bf16.msra.mxu1 %v1816_v54  ;;  %v940_v41 = vpack.c.bf16 %v925_v36, %v925_v36 }
  0x7d   :  { %1394 = vmatprep.subr.bf16.mxu1 %v1822_v56 }
  0x7e   :  { %1055 = vmatprep.mubr.bf16.mxu1 %v940_v41 }
  0x80   :  { %1395 = vmatpush3.bf16.msra.mxu1 %v1828_v58 }
  0x81   :  { %1396 = vmatprep.subr.bf16.mxu1 %v1834_v60 }
  0x84   :  { %1397 = vmatpush3.bf16.msra.mxu1 %v1840_v62 }
  0x85   :  { %1398 = vmatprep.subr.bf16.mxu1 %v1846_v22 }
  0x88   :  { %1399 = vmatpush3.bf16.msra.mxu1 %v1852_v24 }
  0x89   :  { %1400 = vmatprep.subr.bf16.mxu1 %v1858_v30 }
  0x8c   :  { %1401 = vmatpush3.bf16.msra.mxu1 %v1864_v39 }
  0x8d   :  { %1402 = vmatprep.subr.bf16.mxu1 %v1870_v43 }
  0x90   :  { %1403 = vmatpush3.bf16.msra.mxu1 %v1876_v45 }
  0x91   :  { %1404 = vmatprep.subr.bf16.mxu1 %v1882_v48 }
  0x94   :  { %1405 = vmatpush3.bf16.msra.mxu1 %v1888_v52 }
  0x95   :  { %1463 = vmatprep.subr.bf16.mxu1 %v1643_v2 }
  0x97   :  { %1056 = vmatmul.mubr.bf16.vlgmr.msra.gmra.mrb[12].mxu1 %v939_v46 }
  0x98   :  { %1464 = vmatpush3.bf16.msra.mxu1 %v1557_v0  ;;  %1479 = vmatprep.mubr.msk.bf16.mxu1 %vm1644_vm0, %v1643_v2 }
  0x99   :  { %1465 = vmatprep.subr.bf16.mxu1 %v1643_v2 }
  0x9c   :  { %1466 = vmatpush3.bf16.msra.mxu1 %v1558_v4  ;;  %v909_v4 = vcombine.high %v907_v38, %v907_v38 }
  0x9d   :  { %1467 = vmatprep.subr.bf16.mxu1 %v1643_v2 }
  0xa0   :  { %1468 = vmatpush3.bf16.msra.mxu1 %v1559_v6 }
  0xa1   :  { %1469 = vmatprep.subr.bf16.mxu1 %v1643_v2 }
  0xa4   :  { %1470 = vmatpush3.bf16.msra.mxu1 %v1560_v8 }
  0xa5   :  { %1471 = vmatprep.subr.bf16.mxu1 %v1643_v2 }
  0xa8   :  { %1472 = vmatpush3.bf16.msra.mxu1 %v1561_v10  ;;  %v938_v10 = vpack.c.bf16 %v909_v4, %v909_v4 }
  0xa9   :  { %1473 = vmatprep.subr.bf16.mxu1 %v1643_v2 }
  0xac   :  { %1474 = vmatpush3.bf16.msra.mxu1 %v1562_v12 }
  0xad   :  { %1475 = vmatprep.subr.bf16.mxu1 %v1643_v2 }
  0xb0   :  { %1476 = vmatpush3.bf16.msra.mxu1 %v1563_v14 }
  0xb1   :  { %1477 = vmatprep.subr.bf16.mxu1 %v1643_v2 }
  0xb4   :  { %1478 = vmatpush3.bf16.msra.mxu1 %v1564_v16 }
 0x109   :  { %v1265_v51 = vpop.f32.mrb[0].mxu0 }
 0x10a   :  { %v1266_v54 = vpop.f32.mrb[1].mxu0  ;;  %v1287_v55 = vpop.f32.mrb[0].mxu1 }
 0x10b   :  { %v1267_v56 = vadd.f32 %v1266_v54, %v1265_v51  ;;  %v1268_v57 = vpop.f32.mrb[2].mxu0  ;;  %v1288_v58 = vpop.f32.mrb[1].mxu1 }
 0x10c   :  { %v1269_v59 = vpop.f32.mrb[3].mxu0  ;;  %v1289_v61 = vadd.f32 %v1288_v58, %v1287_v55  ;;  %v1290_v62 = vpop.f32.mrb[2].mxu1 }
 0x10d   :  { %v667_v60 = vadd.f32 %v1267_v56, %v1997_v53  ;;  %v1291_v63 = vpop.f32.mrb[3].mxu1 }
 0x10f   :  { %v707_v22 = vadd.f32 %v1289_v61, %v667_v60 }
 0x129   :  { %v1309_v24 = vpop.f32.mrb[4].mxu0 }
 0x12a   :  { %v1310_v30 = vpop.f32.mrb[5].mxu0  ;;  %v1331_v39 = vpop.f32.mrb[4].mxu1 }
 0x12b   :  { %v1311_v40 = vadd.f32 %v1310_v30, %v1309_v24  ;;  %v1312_v43 = vpop.f32.mrb[6].mxu0  ;;  %v1332_v44 = vpop.f32.mrb[5].mxu1 }
 0x12c   :  { %v1313_v45 = vpop.f32.mrb[7].mxu0  ;;  %v1333_v52 = vadd.f32 %v1332_v44, %v1331_v39  ;;  %v1334_v0 = vpop.f32.mrb[6].mxu1 }
 0x12d   :  { %v747_v48 = vadd.f32 %v1311_v40, %v707_v22  ;;  %v1335_v2 = vpop.f32.mrb[7].mxu1 }
 0x12f   :  { %v787_v6 = vadd.f32 %v1333_v52, %v747_v48 }
 0x131   :  { %v792_v8 = vmax.f32 %v787_v6, 0.0 }
 0x133   :  { %v793_v12 = vpack.c.bf16 %v792_v8, %v792_v8 }
 0x135   :  { %1460 = vmatmul.mubr.bf16.vlgmr.msra.gmra.mrb[8].mxu0 %v793_v12 }
 0x136   :  { %1369 = vmatpush3.bf16.msra.mxu0 %v1707_v3  ;;  %1015 = vmatprep.mubr.bf16.mxu0 %v938_v10  ;;  %v910_v3 = vcombine.high %v1977_v1, %v1977_v1 }
 0x137   :  { %1370 = vmatprep.subr.bf16.mxu0 %v1713_v5 }
 0x138   :  { %v924_v5 = vrot.slane %v910_v3, %v1787_v35  ;;  %v2104_v35 = vld [vmem:[#allocation20_spill] sm:$0xff] }
 0x13a   :  { %1371 = vmatpush3.bf16.msra.mxu0 %v1719_v7  ;;  %v926_v7 = vcombine.high %v924_v5, %v924_v5 }
 0x13b   :  { %1372 = vmatprep.subr.bf16.mxu0 %v1725_v9  ;;  %v937_v9 = vpack.c.bf16 %v907_v38, %v907_v38 }
 0x13e   :  { %1373 = vmatpush3.bf16.msra.mxu0 %v1731_v11  ;;  %v942_v11 = vpack.c.bf16 %v926_v7, %v926_v7 }
 0x13f   :  { %1374 = vmatprep.subr.bf16.mxu0 %v1737_v13  ;;  %v2095_v13 = vld [vmem:[#allocation11_spill] sm:$0xff] }
 0x142   :  { %1375 = vmatpush3.bf16.msra.mxu0 %v1743_v15  ;;  %v2096_v15 = vld [vmem:[#allocation12_spill] sm:$0xff] }
 0x143   :  { %1376 = vmatprep.subr.bf16.mxu0 %v1749_v17  ;;  %v2097_v17 = vld [vmem:[#allocation13_spill] sm:$0xff] }
 0x146   :  { %1377 = vmatpush3.bf16.msra.mxu0 %v1755_v19  ;;  %v2098_v19 = vld [vmem:[#allocation14_spill] sm:$0xff] }
 0x147   :  { %1378 = vmatprep.subr.bf16.mxu0 %v1761_v21  ;;  %v2099_v21 = vld [vmem:[#allocation15_spill] sm:$0xff] }
 0x14a   :  { %1379 = vmatpush3.bf16.msra.mxu0 %v1767_v26  ;;  %v2100_v26 = vld [vmem:[#allocation16_spill] sm:$0xff] }
 0x14b   :  { %1380 = vmatprep.subr.bf16.mxu0 %v1773_v28  ;;  %v2101_v28 = vld [vmem:[#allocation17_spill] sm:$0xff] }
 0x14e   :  { %1381 = vmatpush3.bf16.msra.mxu0 %v1779_v32  ;;  %v2102_v32 = vld [vmem:[#allocation18_spill] sm:$0xff] }
 0x14f   :  { %1382 = vmatprep.subr.bf16.mxu0 %v1785_v34  ;;  %v2103_v34 = vld [vmem:[#allocation19_spill] sm:$0xff] }
 0x152   :  { %1383 = vmatpush3.bf16.msra.mxu0 %v1793_v37  ;;  %v2105_v37 = vld [vmem:[#allocation21_spill] sm:$0xff] }
 0x153   :  { %1412 = vmatprep.subr.bf16.mxu0 %v1803_v42  ;;  %v941_v42 = vpack.c.bf16 %v924_v5, %v924_v5 }
 0x155   :  { %1016 = vmatmul.mubr.bf16.vlgmr.msra.gmra.mrb[12].mxu0 %v937_v9 }
 0x156   :  { %1413 = vmatpush3.bf16.msra.mxu0 %v1810_v49  ;;  %1095 = vmatprep.mubr.bf16.mxu0 %v942_v11  ;;  %v1362_v49 = vpop.f32.mrb[8].mxu1 }
 0x157   :  { %1414 = vmatprep.subr.bf16.mxu0 %v2095_v13  ;;  %v1363_v14 = vpop.f32.mrb[9].mxu1 }
 0x158   :  { %v1364_v16 = vadd.f32 %v1363_v14, %v1362_v49  ;;  %v1365_v18 = vpop.f32.mrb[10].mxu1 }
 0x159   :  { %v1366_v20 = vpop.f32.mrb[11].mxu1 }
 0x15a   :  { %1415 = vmatpush3.bf16.msra.mxu0 %v2096_v15  ;;  %v978_v51 = vadd.f32 %v1364_v16, %v1997_v53 }
 0x15b   :  { %1416 = vmatprep.subr.bf16.mxu0 %v2097_v17 }
 0x15e   :  { %1417 = vmatpush3.bf16.msra.mxu0 %v2098_v19 }
 0x15f   :  { %1418 = vmatprep.subr.bf16.mxu0 %v2099_v21 }
 0x162   :  { %1419 = vmatpush3.bf16.msra.mxu0 %v2100_v26 }
 0x163   :  { %1420 = vmatprep.subr.bf16.mxu0 %v2101_v28 }
 0x166   :  { %1421 = vmatpush3.bf16.msra.mxu0 %v2102_v32 }
 0x167   :  { %1422 = vmatprep.subr.bf16.mxu0 %v2103_v34 }
 0x16a   :  { %1423 = vmatpush3.bf16.msra.mxu0 %v2104_v35  ;;  %v1406_v25 = vpop.f32.mrb[12].mxu1 }
 0x16b   :  { %1424 = vmatprep.subr.bf16.mxu0 %v2105_v37  ;;  %v1407_v27 = vpop.f32.mrb[13].mxu1 }
 0x16c   :  { %v1408_v31 = vadd.f32 %v1407_v27, %v1406_v25  ;;  %v1409_v1 = vpop.f32.mrb[14].mxu1 }
 0x16d   :  { %v1410_v33 = vpop.f32.mrb[15].mxu1 }
 0x16e   :  { %1425 = vmatpush3.bf16.msra.mxu0 %v1879_v47  ;;  %v1240_v47 = vld [vmem:[%s2070_s5] ss:$0 sm:$0xff]  ;;  %s1645_s5 = smov [#allocation5]  }
 0x16f   :  { %1426 = vmatprep.subr.bf16.mxu0 %v1885_v50  ;;  %s1152_s2 = sshll.u32 %s1645_s5, 4  ;;  %s1153_s2 = int_to_ptr.vmem [resolvable:$true] %s1152_s2 }
 0x170   :  { %s1589_s15 = scalar_lea.vmem %s1153_s2, 32  ;;  %p1594_p9 = scmp.lt.s32.totalorder %s1153_s2, %s1153_s2 }
 0x171   :  { %p1590_p8 = scmp.ne.s32.totalorder %s1153_s2, %s1589_s15  ;;  %p1595_p10 = scmp.lt.s32.totalorder %s1589_s15, %s1589_s15 }
 0x172   :  { %1427 = vmatpush3.bf16.msra.mxu0 %v1894_v29 }
 0x173   :  { %p1596_p11 = por %p1595_p10, %p1594_p9 }
 0x175   :  { %1096 = vmatmul.mubr.bf16.vlgmr.msra.gmra.mrb[16].mxu0 %v941_v42  ;;  %p1597_p12 = pnand %p1596_p11, %p1590_p8 }
 0x208   :  { %v882_v36 = vpop.f32.mrb[8].mxu0 }
 0x209   :  { %v883_v50 = vadd.f32 %v1240_v47, %v882_v36  ;;  %v1461_v41 = vpop.f32.mrb[9].mxu0 }
 0x20a   :  { %v885_v46 = vpop.f32.mrb[10].mxu0 }
 0x20b   :  { %888 = vst [vmem:[#allocation5] sm:$0x3] %v883_v50  ;;  %v1462_v29 = vpop.f32.mrb[11].mxu0 }
 0x228   :  { %v1384_v54 = vpop.f32.mrb[12].mxu0 }
 0x229   :  { %v1385_v55 = vpop.f32.mrb[13].mxu0 }
 0x22a   :  { %v1386_v56 = vadd.f32 %v1385_v55, %v1384_v54  ;;  %v1387_v57 = vpop.f32.mrb[14].mxu0 }
 0x22b   :  { %v1388_v58 = vpop.f32.mrb[15].mxu0 }
 0x22c   :  { %v1018_v59 = vadd.f32 %v1386_v56, %v978_v51 }
 0x22e   :  { %v1058_v60 = vadd.f32 %v1408_v31, %v1018_v59 }
 0x248   :  { %v1428_v61 = vpop.f32.mrb[16].mxu0 }
 0x249   :  { %v1429_v62 = vpop.f32.mrb[17].mxu0 }
 0x24a   :  { %v1430_v63 = vadd.f32 %v1429_v62, %v1428_v61  ;;  %v1431_v22 = vpop.f32.mrb[18].mxu0 }
 0x24b   :  { %v1432_v23 = vpop.f32.mrb[19].mxu0 }
 0x24c   :  { %v1098_v24 = vadd.f32 %v1430_v63, %v1058_v60 }
 0x24e   :  { %v1103_v30 = vmax.f32 %v1098_v24, 0.0 }
 0x250   :  { %v1104_v38 = vpack.c.bf16 %v1103_v30, %v1103_v30 }
 0x252   :  { %1480 = vmatmul.mubr.bf16.vlgmr.msra.gmra.mrb[16].mxu1 %v1104_v38 }
 0x253   :  { %1600 = shalt.err (!%p1597_p12)
}
 0x254   :  { %s1601_s0 = scalar_lea.hbm %s2071_s6, 32 }
 0x255   :  { %p1602_p13 = scmp.ne.s32.totalorder %s2071_s6, %s1601_s0  ;;  %p1605_p0 = scmp.lt.u32.totalorder %s1601_s0, %s2071_s6 }
 0x257   :  { %p1607_p1 = pnand %p1605_p0, %p1602_p13 }
 0x259   :  { %1610 = shalt.err (!%p1607_p1)
}
 0x25a   :  { %1155 = dma.vmem_to_hbm [thread:$0]  %s1153_s2, 32, %s2071_s6, [#allocation4]  }
 0x25b   :  { %s1646_s24 = smov [#allocation6]  }
 0x25c   :  { %s1162_s25 = sshll.u32 %s1646_s24, 4  ;;  %s1163_s25 = int_to_ptr.vmem [resolvable:$true] %s1162_s25 }
 0x25d   :  { %s1611_s26 = scalar_lea.vmem %s1163_s25, 32  ;;  %p1616_p3 = scmp.lt.s32.totalorder %s1163_s25, %s1163_s25 }
 0x25e   :  { %p1612_p2 = scmp.ne.s32.totalorder %s1163_s25, %s1611_s26  ;;  %p1617_p4 = scmp.lt.s32.totalorder %s1611_s26, %s1611_s26 }
 0x260   :  { %p1618_p5 = por %p1617_p4, %p1616_p3 }
 0x262   :  { %p1619_p6 = pnand %p1618_p5, %p1612_p2 }
 0x325   :  { %v1139_v53 = vpop.f32.mrb[16].mxu1 }
 0x326   :  { %v1140_v39 = vadd.f32 %v1240_v47, %v1139_v53  ;;  %v1481_v40 = vpop.f32.mrb[17].mxu1 }
 0x327   :  { %v1142_v43 = vpop.f32.mrb[18].mxu1 }
 0x328   :  { %1145 = vst [vmem:[#allocation6] sm:$0x3] %v1140_v39  ;;  %v1482_v44 = vpop.f32.mrb[19].mxu1 }
 0x329   :  { %1622 = shalt.err (!%p1619_p6)
}
 0x32a   :  { %s1623_s6 = scalar_lea.hbm %s2072_s7, 32 }
 0x32b   :  { %p1624_p7 = scmp.ne.s32.totalorder %s2072_s7, %s1623_s6  ;;  %p1627_p8 = scmp.lt.u32.totalorder %s1623_s6, %s2072_s7 }
 0x32d   :  { %p1629_p9 = pnand %p1627_p8, %p1624_p7 }
 0x32f   :  { %1632 = shalt.err (!%p1629_p9)
}
 0x330   :  { %1165 = dma.vmem_to_hbm [thread:$0]  %s1163_s25, 32, %s2072_s7, [#allocation7]  }
 0x331   :  { %1635 = dma.done.wait [#allocation4], 32  }
 0x332   :  { %1636 = vsyncadd [#allocation4], 4294967264 }
 0x333   :  { %1637 = dma.done.wait [#allocation7], 32  }
 0x334   :  { %1638 = vsyncadd [#allocation7], 4294967264 }
 0x335   :  { %1172 = vsyncpa [#allocation3], 1 }
 0x336   :  { %1173 = vsyncpa [#allocation4], 1 }
 0x337   :  { %1174 = vsyncpa [#allocation7], 1 }

</bundles_post_ra>
